<compile_context>
chip_gen: v6e
topology: v6e:2x2x1
jax: 0.10.0
libtpu: 0.0.40
codegen_flags: <defaults>
</compile_context>

<pallas_src>
import functools
import math

import jax
import jax.numpy as jnp
import numpy as np
from jax.experimental import pallas as pl
from jax.experimental.pallas import tpu as pltpu


def _round_up(x, m):
    return ((x + m - 1) // m) * m


# ----------------------------------------------------------------------------
# Pallas kernels
# ----------------------------------------------------------------------------
def _linear_kernel(x_ref, w_ref, b_ref, o_ref, *, relu):
    """GEMM tile -> +bias -> optional ReLU (MXU + VPU epilogue)."""
    y = jnp.dot(x_ref[...], w_ref[...], preferred_element_type=jnp.float32)
    y = y + b_ref[...]
    if relu:
        y = jnp.maximum(y, 0.0)
    o_ref[...] = y


def _head_kernel(x_ref, w1_ref, b1_ref, w2_ref, b2_ref, o_ref, h_ref):
    """Fused noisy1(ReLU) + noisy2: hidden lives only in VMEM scratch."""
    h = jnp.dot(x_ref[...], w1_ref[...], preferred_element_type=jnp.float32)
    h_ref[...] = jnp.maximum(h + b1_ref[...], 0.0)
    o_ref[...] = (jnp.dot(h_ref[...], w2_ref[...],
                          preferred_element_type=jnp.float32) + b2_ref[...])


def _fma_kernel(mu_ref, sig_ref, eps_ref, o_ref):
    """One-time noisy-weight build: w = mu + sigma * eps."""
    o_ref[...] = mu_ref[...] + sig_ref[...] * eps_ref[...]


# ----------------------------------------------------------------------------
# Wrappers
# ----------------------------------------------------------------------------
def _pick_row_tile(M, tm):
    """Row tile honoring the (8,128) block constraint."""
    if M >= tm:
        return tm
    return max(8, _round_up(M, 8))


def linear_pallas(x, w, b, *, relu=False, tm=512):
    """x: (M, K) f32, w: (K, N) f32, b: (N,) f32 -> (M, N) f32. M-tiled grid."""
    M, K = x.shape
    K2, N = w.shape
    assert K == K2
    TM = _pick_row_tile(M, tm)
    Mp = _round_up(M, TM)
    if Mp != M:
        x = jnp.pad(x, ((0, Mp - M), (0, 0)))
    b2 = b.reshape(1, N)

    flops = 2 * Mp * N * K
    bytes_accessed = 4 * (Mp * K + K * N + N + Mp * N)
    out = pl.pallas_call(
        functools.partial(_linear_kernel, relu=relu),
        out_shape=jax.ShapeDtypeStruct((Mp, N), jnp.float32),
        grid=(Mp // TM,),
        in_specs=[pl.BlockSpec((TM, K), lambda i: (i, 0)),
                  pl.BlockSpec((K, N), lambda i: (0, 0)),
                  pl.BlockSpec((1, N), lambda i: (0, 0))],
        out_specs=pl.BlockSpec((TM, N), lambda i: (i, 0)),
        compiler_params=pltpu.CompilerParams(
            dimension_semantics=("parallel",)),
        cost_estimate=pl.CostEstimate(flops=flops, transcendentals=0,
                                      bytes_accessed=bytes_accessed),
    )(x, w, b2)
    return out[:M] if Mp != M else out


def noisy_head_pallas(x, w1, b1, w2, b2, *, tm=256):
    """Fused noisy1(ReLU)+noisy2. w1:(K,H), w2:(H,Np=128-padded). Returns (M,Np)."""
    M, K = x.shape
    K2, H = w1.shape
    H2, NP = w2.shape
    assert K == K2 and H == H2
    TM = _pick_row_tile(M, tm)
    Mp = _round_up(M, TM)
    if Mp != M:
        x = jnp.pad(x, ((0, Mp - M), (0, 0)))

    flops = 2 * Mp * (K * H + H * NP)
    bytes_accessed = 4 * (Mp * K + K * H + H + H * NP + NP + Mp * NP)
    out = pl.pallas_call(
        _head_kernel,
        out_shape=jax.ShapeDtypeStruct((Mp, NP), jnp.float32),
        grid=(Mp // TM,),
        in_specs=[pl.BlockSpec((TM, K), lambda i: (i, 0)),
                  pl.BlockSpec((K, H), lambda i: (0, 0)),
                  pl.BlockSpec((1, H), lambda i: (0, 0)),
                  pl.BlockSpec((H, NP), lambda i: (0, 0)),
                  pl.BlockSpec((1, NP), lambda i: (0, 0))],
        out_specs=pl.BlockSpec((TM, NP), lambda i: (i, 0)),
        scratch_shapes=[pltpu.VMEM((TM, H), jnp.float32)],
        compiler_params=pltpu.CompilerParams(
            dimension_semantics=("parallel",)),
        cost_estimate=pl.CostEstimate(flops=flops, transcendentals=0,
                                      bytes_accessed=bytes_accessed),
    )(x, w1, b1.reshape(1, H), w2, b2.reshape(1, NP))
    return out[:M]


def fma_pallas(mu, sig, eps):
    """Elementwise mu + sig*eps (one-time noisy-weight construction)."""
    assert mu.shape == sig.shape == eps.shape
    return pl.pallas_call(
        _fma_kernel,
        out_shape=jax.ShapeDtypeStruct(mu.shape, jnp.float32),
    )(mu, sig, eps)


def conv2d_nhwc_pallas(x_nhwc, w_gemm, b, *, kh, kw, stride, relu=True):
    """Conv2d (VALID) via NHWC patch extraction + M-tiled Pallas GEMM.

    x_nhwc: (B, H, W, C); w_gemm: (kh*kw*C [+pad], Cout) in (kh, kw, C) order.
    Returns NHWC (B, OH, OW, Cout).
    """
    B, H, W, C = x_nhwc.shape
    OH = (H - kh) // stride + 1
    OW = (W - kw) // stride + 1
    cols = []
    for i in range(kh):
        for j in range(kw):
            cols.append(
                x_nhwc[:, i:i + OH * stride:stride, j:j + OW * stride:stride, :])
    patches = jnp.stack(cols, axis=3)                    # (B, OH, OW, kh*kw, C)
    patches = patches.reshape(B * OH * OW, kh * kw * C)
    k_pad = w_gemm.shape[0] - kh * kw * C                # zero-padded K rows
    if k_pad:
        patches = jnp.pad(patches, ((0, 0), (0, k_pad)))
    y = linear_pallas(patches, w_gemm, b, relu=relu)
    return y.reshape(B, OH, OW, w_gemm.shape[1])


# ----------------------------------------------------------------------------
# Parameter construction (mirrors the PyTorch module's __init__, raw layouts)
# ----------------------------------------------------------------------------
def _scale_noise(x):
    return jnp.sign(x) * jnp.sqrt(jnp.abs(x))


def init_noisy(key, in_f, out_f, std_init=0.5):
    k1, k2, k3, k4 = jax.random.split(key, 4)
    mu_range = 1.0 / math.sqrt(in_f)
    w_mu = jax.random.uniform(k1, (out_f, in_f), jnp.float32, -mu_range, mu_range)
    w_sig = jnp.full((out_f, in_f), std_init / math.sqrt(in_f), jnp.float32)
    b_mu = jax.random.uniform(k2, (out_f,), jnp.float32, -mu_range, mu_range)
    b_sig = jnp.full((out_f,), std_init / math.sqrt(out_f), jnp.float32)
    eps_in = _scale_noise(jax.random.normal(k3, (in_f,), jnp.float32))
    eps_out = _scale_noise(jax.random.normal(k4, (out_f,), jnp.float32))
    return {"w_mu": w_mu, "w_sig": w_sig, "w_eps": jnp.outer(eps_out, eps_in),
            "b_mu": b_mu, "b_sig": b_sig, "b_eps": eps_out}


def init_conv(key, cout, cin, k):
    k1, k2 = jax.random.split(key)
    bound = 1.0 / math.sqrt(cin * k * k)
    w = jax.random.uniform(k1, (cout, cin, k, k), jnp.float32, -bound, bound)
    b = jax.random.uniform(k2, (cout,), jnp.float32, -bound, bound)
    return w, b


def conv_out_hw(input_shape):
    _, h, w = input_shape
    h = (h - 8) // 4 + 1; w = (w - 8) // 4 + 1
    h = (h - 4) // 2 + 1; w = (w - 4) // 2 + 1
    h = h - 3 + 1;        w = w - 3 + 1
    return h, w


def feature_size(input_shape):
    h, w = conv_out_hw(input_shape)
    return 64 * h * w


def init_noisy_dqn(key, input_shape, num_actions, noisy_std=0.5):
    ks = jax.random.split(key, 5)
    c1w, c1b = init_conv(ks[0], 32, input_shape[0], 8)
    c2w, c2b = init_conv(ks[1], 64, 32, 4)
    c3w, c3b = init_conv(ks[2], 64, 64, 3)
    feat = feature_size(input_shape)
    return {
        "conv1_w": c1w, "conv1_b": c1b,
        "conv2_w": c2w, "conv2_b": c2b,
        "conv3_w": c3w, "conv3_b": c3b,
        "noisy1": init_noisy(ks[3], feat, 512, noisy_std),
        "noisy2": init_noisy(ks[4], 512, num_actions, noisy_std),
    }


# ----------------------------------------------------------------------------
# One-time prep: GEMM-ready conv weights + precomputed noisy weights.
# NOTE: must be re-run whenever the noisy layers' epsilon is resampled
#       (reset_noise), otherwise it diverges from the PyTorch module.
# ----------------------------------------------------------------------------
def prepare_params(params, input_shape, num_actions):
    def conv_gemm(w_oihw, scale=1.0, k_pad=0):
        cout, cin, kh, kw = w_oihw.shape
        # (kh, kw, cin, cout) flattened -> matches NHWC patch column order.
        w = jnp.transpose(w_oihw, (2, 3, 1, 0)).reshape(kh * kw * cin, cout)
        w = w * scale
        if k_pad:
            w = jnp.pad(w, ((0, k_pad), (0, 0)))
        return w

    def noisy_eff(p, n_pad=0):
        w_mu, w_sig, w_eps = p["w_mu"].T, p["w_sig"].T, p["w_eps"].T   # (K, N)
        b = p["b_mu"] + p["b_sig"] * p["b_eps"]
        if n_pad:
            w_mu = jnp.pad(w_mu, ((0, 0), (0, n_pad)))
            w_sig = jnp.pad(w_sig, ((0, 0), (0, n_pad)))
            w_eps = jnp.pad(w_eps, ((0, 0), (0, n_pad)))
            b = jnp.pad(b, ((0, n_pad),))
        w = fma_pallas(w_mu, w_sig, w_eps)    # w = mu + sigma*eps (once)
        return w, b

    conv3_k = 64 * 3 * 3                                   # 576
    conv3_k_pad = _round_up(conv3_k, 128) - conv3_k        # -> 640
    n_act_pad = _round_up(num_actions, 128) - num_actions  # lane-dense output

    w1, b1 = noisy_eff(params["noisy1"])
    w2, b2 = noisy_eff(params["noisy2"], n_pad=n_act_pad)

    # Fold PyTorch's (C, H, W) flatten order into a one-time row permutation of
    # w1 so the forward path consumes the NHWC-flattened conv3 output directly
    # (no activation transpose in the hot path).
    fh, fw = conv_out_hw(input_shape)
    fc = 64
    w1 = (w1.reshape(fc, fh, fw, w1.shape[1])
             .transpose(1, 2, 0, 3)
             .reshape(fc * fh * fw, w1.shape[1]))

    return {
        # 1/255 input scale folded into conv1 weights.
        "conv1_w": conv_gemm(params["conv1_w"], scale=1.0 / 255.0),
        "conv1_b": params["conv1_b"],
        "conv2_w": conv_gemm(params["conv2_w"]),
        "conv2_b": params["conv2_b"],
        "conv3_w": conv_gemm(params["conv3_w"], k_pad=conv3_k_pad),
        "conv3_b": params["conv3_b"],
        "head_w1": w1, "head_b1": b1,
        "head_w2": w2, "head_b2": b2,
    }


# ----------------------------------------------------------------------------
# Forward pass (training-mode NoisyDQN)
# ----------------------------------------------------------------------------
def noisy_dqn_forward(prep, x_nchw, num_actions):
    """x: (B, C, H, W) f32 raw 0..255 pixels -> (B, num_actions)."""
    B = x_nchw.shape[0]
    x = jnp.transpose(x_nchw, (0, 2, 3, 1))      # NCHW -> NHWC once, stay NHWC
    y = conv2d_nhwc_pallas(x, prep["conv1_w"], prep["conv1_b"],
                           kh=8, kw=8, stride=4, relu=True)
    y = conv2d_nhwc_pallas(y, prep["conv2_w"], prep["conv2_b"],
                           kh=4, kw=4, stride=2, relu=True)
    y = conv2d_nhwc_pallas(y, prep["conv3_w"], prep["conv3_b"],
                           kh=3, kw=3, stride=1, relu=True)
    # NHWC flatten; the (C,H,W)-order match with PyTorch's .view(B, -1) is
    # baked into head_w1's row permutation at prep time.
    y = y.reshape(B, -1)
    q = noisy_head_pallas(y, prep["head_w1"], prep["head_b1"],
                          prep["head_w2"], prep["head_b2"])
    return q[:, :num_actions]


# ----------------------------------------------------------------------------
# Pure-JAX reference (for correctness checking, raw PyTorch-layout params)
# ----------------------------------------------------------------------------
def reference_forward(params, x):
    hp = jax.lax.Precision.HIGHEST

    def conv(x, w, b, stride):
        y = jax.lax.conv_general_dilated(
            x, w, (stride, stride), "VALID",
            dimension_numbers=("NCHW", "OIHW", "NCHW"), precision=hp)
        return jnp.maximum(y + b[None, :, None, None], 0.0)

    y = conv(x / 255.0, params["conv1_w"], params["conv1_b"], 4)
    y = conv(y, params["conv2_w"], params["conv2_b"], 2)
    y = conv(y, params["conv3_w"], params["conv3_b"], 1)
    y = y.reshape(x.shape[0], -1)

    def noisy(y, p, relu):
        w = p["w_mu"] + p["w_sig"] * p["w_eps"]          # (out, in)
        b = p["b_mu"] + p["b_sig"] * p["b_eps"]
        out = jnp.dot(y, w.T, precision=hp) + b
        return jnp.maximum(out, 0.0) if relu else out

    y = noisy(y, params["noisy1"], True)
    y = noisy(y, params["noisy2"], False)
    return y


# ----------------------------------------------------------------------------
if __name__ == "__main__":
    key = jax.random.PRNGKey(0)
    k_params, k_x = jax.random.split(key)

    input_shape = (4, 44, 44)   # (C, H, W); feature_size = 64 * 2 * 2 = 256
    num_actions = 6
    batch = 2

    params = init_noisy_dqn(k_params, input_shape, num_actions, noisy_std=0.5)
    prep = prepare_params(params, input_shape, num_actions)
    x = jax.random.uniform(k_x, (batch,) + input_shape, jnp.float32, 0.0, 255.0)

    out = jax.block_until_ready(noisy_dqn_forward(prep, x, num_actions))
    ref = jax.block_until_ready(reference_forward(params, x))

    assert out.shape == (batch, num_actions), out.shape
    np.testing.assert_allclose(np.asarray(out), np.asarray(ref), rtol=2e-3, atol=2e-3)

    print("KERNEL_OK")
</pallas_src>

<mosaic_0001>
module attributes {stable_mosaic.version = 11 : i64} {
  func.func @_fma_kernel(%arg0: memref<256x512xf32, #tpu.memory_space<vmem>>, %arg1: memref<256x512xf32, #tpu.memory_space<vmem>>, %arg2: memref<256x512xf32, #tpu.memory_space<vmem>>, %arg3: memref<256x512xf32, #tpu.memory_space<vmem>>) attributes {dimension_semantics = [], scalar_prefetch = 0 : i64, scratch_operands = 0 : i64, tpu.core_type = #tpu.core_type<tc>} {
    %c0 = arith.constant 0 : index
    %c0_0 = arith.constant 0 : index
    %0 = vector.load %arg0[%c0, %c0_0] : memref<256x512xf32, #tpu.memory_space<vmem>>, vector<256x512xf32>
    %c0_1 = arith.constant 0 : index
    %c0_2 = arith.constant 0 : index
    %1 = vector.load %arg1[%c0_1, %c0_2] : memref<256x512xf32, #tpu.memory_space<vmem>>, vector<256x512xf32>
    %c0_3 = arith.constant 0 : index
    %c0_4 = arith.constant 0 : index
    %2 = vector.load %arg2[%c0_3, %c0_4] : memref<256x512xf32, #tpu.memory_space<vmem>>, vector<256x512xf32>
    %3 = arith.mulf %1, %2 : vector<256x512xf32>
    %4 = arith.addf %0, %3 : vector<256x512xf32>
    %c0_5 = arith.constant 0 : index
    %c0_6 = arith.constant 0 : index
    %5 = vector.load %arg3[%c0_5, %c0_6] : memref<256x512xf32, #tpu.memory_space<vmem>>, vector<256x512xf32>
    tpu.vector_store %arg3[%c0_5, %c0_6], %4 {strides = array<i32>} : memref<256x512xf32, #tpu.memory_space<vmem>>, vector<256x512xf32>,
    return
  }
}

</mosaic_0001>

<bundles_post_ra>
// kernel: tpu_custom_call.1
= control target key start
LH: loop header
LB: loop body
LE: loop exit
PB: predicated region body
PF: predicated region fallthrough
CT: control target
= control target key end

     0   :  { %8 = vsyncpa [#allocation3], 0  ;;  %s984_s0 = inlined_call_operand.hbm [shape: f32[256,512], index: 0, kind: input, shape index: {}]   ;;  %s985_s1 = inlined_call_operand.hbm [shape: f32[256,512], index: 1, kind: input, shape index: {}]   ;;  %s986_s2 = inlined_call_operand.hbm [shape: f32[256,512], index: 2, kind: input, shape index: {}]   ;;  %s987_s3 = inlined_call_operand.hbm [shape: f32[256,512], index: 3, kind: output, shape index: {}]  }
   0x1   :  { %9 = vsyncpa [#allocation6], 0 }
   0x2   :  { %10 = vsyncpa [#allocation4], 0  ;;  %s934_s12 = smov [#allocation5]   ;;  %s935_s14 = smov [#allocation2]  }
   0x3   :  { %s28_s13 = sshll.u32 %s934_s12, 4  ;;  %s16_s15 = sshll.u32 %s935_s14, 4  ;;  %s29_s13 = int_to_ptr.vmem [resolvable:$true] %s28_s13  ;;  %s17_s15 = int_to_ptr.vmem [resolvable:$true] %s16_s15 }
   0x4   :  { %s856_s16 = scalar_lea.vmem %s29_s13, 16384  ;;  %p861_p1 = scmp.lt.s32.totalorder %s29_s13, %s29_s13 }
   0x5   :  { %p857_p0 = scmp.ne.s32.totalorder %s29_s13, %s856_s16  ;;  %p862_p2 = scmp.lt.s32.totalorder %s856_s16, %s856_s16 }
   0x7   :  { %p863_p3 = por %p862_p2, %p861_p1 }
   0x9   :  { %p864_p4 = pnand %p863_p3, %p857_p0 }
   0xb   :  { %867 = shalt.err (!%p864_p4)
}
   0xc   :  { %s936_s17 = smov 512   ;;  %s937_s18 = smov 32  }
   0xd   :  { %34 = dma.hbm_to_vmem [thread:$0]  %s985_s1, 16384, %s29_s13, [#allocation6], %s936_s17, %s936_s17, %s937_s18  }
   0xe   :  { %s876_s21 = scalar_lea.vmem %s17_s15, 16384  ;;  %p881_p6 = scmp.lt.s32.totalorder %s17_s15, %s17_s15 }
   0xf   :  { %p877_p5 = scmp.ne.s32.totalorder %s17_s15, %s876_s21  ;;  %p882_p7 = scmp.lt.s32.totalorder %s876_s21, %s876_s21 }
  0x11   :  { %p883_p8 = por %p882_p7, %p881_p6 }
  0x13   :  { %p884_p9 = pnand %p883_p8, %p877_p5 }
  0x15   :  { %887 = shalt.err (!%p884_p9)
}
  0x16   :  { %22 = dma.hbm_to_vmem [thread:$0]  %s984_s0, 16384, %s17_s15, [#allocation3], %s936_s17, %s936_s17, %s937_s18  }
  0x17   :  { %s938_s24 = smov [#allocation7]  }
  0x18   :  { %s40_s25 = sshll.u32 %s938_s24, 4  ;;  %s41_s25 = int_to_ptr.vmem [resolvable:$true] %s40_s25 }
  0x19   :  { %s896_s26 = scalar_lea.vmem %s41_s25, 16384  ;;  %p901_p11 = scmp.lt.s32.totalorder %s41_s25, %s41_s25 }
  0x1a   :  { %p897_p10 = scmp.ne.s32.totalorder %s41_s25, %s896_s26  ;;  %p902_p12 = scmp.lt.s32.totalorder %s896_s26, %s896_s26 }
  0x1c   :  { %p903_p13 = por %p902_p12, %p901_p11 }
  0x1e   :  { %p904_p0 = pnand %p903_p13, %p897_p10 }
  0x20   :  { %907 = shalt.err (!%p904_p0)
}
  0x21   :  { %46 = dma.hbm_to_vmem [thread:$0]  %s986_s2, 16384, %s41_s25, [#allocation6], %s936_s17, %s936_s17, %s937_s18  }
  0x22   :  { %928 = dma.done.wait [#allocation3], 16384  }
  0x23   :  { %929 = vsyncadd [#allocation3], 4294950912 }
  0x24   :  { %930 = dma.done.wait [#allocation6], 32768  }
  0x25   :  { %931 = vsyncadd [#allocation6], 4294934528  ;;  %v56_v0 = vld [vmem:[#allocation2] sm:$0xff]  ;;  %v57_v4 = vld [vmem:[#allocation2 + $0x8] sm:$0xff]  ;;  %s939_s0 = smov [#allocation8]  }
  0x26   :  { %v184_v1 = vld [vmem:[#allocation5] sm:$0xff]  ;;  %v185_v5 = vld [vmem:[#allocation5 + $0x8] sm:$0xff]  ;;  %v58_v8 = vld [vmem:[#allocation2 + $0x10] sm:$0xff]  ;;  %s829_s2 = sshll.u32 %s939_s0, 4  ;;  %s830_s2 = int_to_ptr.vmem [resolvable:$true] %s829_s2 }
  0x27   :  { %v312_v2 = vld [vmem:[#allocation7] sm:$0xff]  ;;  %v313_v6 = vld [vmem:[#allocation7 + $0x8] sm:$0xff]  ;;  %v186_v9 = vld [vmem:[#allocation5 + $0x10] sm:$0xff]  ;;  %s908_s28 = scalar_lea.vmem %s830_s2, 16384  ;;  %p913_p2 = scmp.lt.s32.totalorder %s830_s2, %s830_s2 }
  0x28   :  { %v440_v3 = vmul.f32 %v312_v2, %v184_v1  ;;  %v441_v7 = vmul.f32 %v313_v6, %v185_v5  ;;  %v314_v10 = vld [vmem:[#allocation7 + $0x10] sm:$0xff]  ;;  %v59_v13 = vld [vmem:[#allocation2 + $0x18] sm:$0xff]  ;;  %v60_v18 = vld [vmem:[#allocation2 + $0x20] sm:$0xff]  ;;  %p909_p1 = scmp.ne.s32.totalorder %s830_s2, %s908_s28  ;;  %p914_p3 = scmp.lt.s32.totalorder %s908_s28, %s908_s28 }
  0x29   :  { %v442_v12 = vmul.f32 %v314_v10, %v186_v9  ;;  %v187_v14 = vld [vmem:[#allocation5 + $0x18] sm:$0xff]  ;;  %v188_v19 = vld [vmem:[#allocation5 + $0x20] sm:$0xff]  ;;  %v61_v23 = vld [vmem:[#allocation2 + $0x28] sm:$0xff] }
  0x2a   :  { %v568_v11 = vadd.f32 %v440_v3, %v56_v0  ;;  %v315_v15 = vld [vmem:[#allocation7 + $0x18] sm:$0xff]  ;;  %v569_v16 = vadd.f32 %v441_v7, %v57_v4  ;;  %v316_v20 = vld [vmem:[#allocation7 + $0x20] sm:$0xff]  ;;  %v189_v24 = vld [vmem:[#allocation5 + $0x28] sm:$0xff]  ;;  %p915_p4 = por %p914_p3, %p913_p2 }
  0x2b   :  { %v443_v17 = vmul.f32 %v315_v15, %v187_v14  ;;  %v570_v21 = vadd.f32 %v442_v12, %v58_v8  ;;  %v444_v22 = vmul.f32 %v316_v20, %v188_v19  ;;  %v317_v25 = vld [vmem:[#allocation7 + $0x28] sm:$0xff]  ;;  %v62_v28 = vld [vmem:[#allocation2 + $0x30] sm:$0xff]  ;;  %v63_v33 = vld [vmem:[#allocation2 + $0x38] sm:$0xff] }
  0x2c   :  { %696 = vst [vmem:[#allocation8] sm:$0xff] %v568_v11  ;;  %697 = vst [vmem:[#allocation8 + $0x8] sm:$0xff] %v569_v16  ;;  %v445_v27 = vmul.f32 %v317_v25, %v189_v24  ;;  %v190_v29 = vld [vmem:[#allocation5 + $0x30] sm:$0xff]  ;;  %v191_v34 = vld [vmem:[#allocation5 + $0x38] sm:$0xff]  ;;  %p916_p5 = pnand %p915_p4, %p909_p1 }
  0x2d   :  { %v571_v26 = vadd.f32 %v443_v17, %v59_v13  ;;  %v318_v30 = vld [vmem:[#allocation7 + $0x30] sm:$0xff]  ;;  %698 = vst [vmem:[#allocation8 + $0x10] sm:$0xff] %v570_v21  ;;  %v572_v31 = vadd.f32 %v444_v22, %v60_v18  ;;  %v319_v35 = vld [vmem:[#allocation7 + $0x38] sm:$0xff]  ;;  %v64_v38 = vld [vmem:[#allocation2 + $0x40] sm:$0xff] }
  0x2e   :  { %v446_v32 = vmul.f32 %v318_v30, %v190_v29  ;;  %v573_v36 = vadd.f32 %v445_v27, %v61_v23  ;;  %v447_v37 = vmul.f32 %v319_v35, %v191_v34  ;;  %v192_v39 = vld [vmem:[#allocation5 + $0x40] sm:$0xff]  ;;  %v65_v43 = vld [vmem:[#allocation2 + $0x48] sm:$0xff]  ;;  %v66_v48 = vld [vmem:[#allocation2 + $0x50] sm:$0xff] }
  0x2f   :  { %699 = vst [vmem:[#allocation8 + $0x18] sm:$0xff] %v571_v26  ;;  %v320_v40 = vld [vmem:[#allocation7 + $0x40] sm:$0xff]  ;;  %700 = vst [vmem:[#allocation8 + $0x20] sm:$0xff] %v572_v31  ;;  %v193_v44 = vld [vmem:[#allocation5 + $0x48] sm:$0xff] }
  0x30   :  { %v574_v41 = vadd.f32 %v446_v32, %v62_v28  ;;  %v448_v42 = vmul.f32 %v320_v40, %v192_v39  ;;  %v321_v45 = vld [vmem:[#allocation7 + $0x48] sm:$0xff]  ;;  %701 = vst [vmem:[#allocation8 + $0x28] sm:$0xff] %v573_v36  ;;  %v575_v46 = vadd.f32 %v447_v37, %v63_v33  ;;  %v194_v49 = vld [vmem:[#allocation5 + $0x50] sm:$0xff]  ;;  %v67_v53 = vld [vmem:[#allocation2 + $0x58] sm:$0xff] }
  0x31   :  { %v449_v47 = vmul.f32 %v321_v45, %v193_v44  ;;  %v322_v50 = vld [vmem:[#allocation7 + $0x50] sm:$0xff]  ;;  %v195_v54 = vld [vmem:[#allocation5 + $0x58] sm:$0xff]  ;;  %v68_v58 = vld [vmem:[#allocation2 + $0x60] sm:$0xff] }
  0x32   :  { %702 = vst [vmem:[#allocation8 + $0x30] sm:$0xff] %v574_v41  ;;  %v576_v51 = vadd.f32 %v448_v42, %v64_v38  ;;  %v450_v52 = vmul.f32 %v322_v50, %v194_v49  ;;  %v323_v55 = vld [vmem:[#allocation7 + $0x58] sm:$0xff]  ;;  %703 = vst [vmem:[#allocation8 + $0x38] sm:$0xff] %v575_v46  ;;  %v196_v59 = vld [vmem:[#allocation5 + $0x60] sm:$0xff] }
  0x33   :  { %v577_v56 = vadd.f32 %v449_v47, %v65_v43  ;;  %v451_v57 = vmul.f32 %v323_v55, %v195_v54  ;;  %v324_v60 = vld [vmem:[#allocation7 + $0x60] sm:$0xff]  ;;  %v69_v63 = vld [vmem:[#allocation2 + $0x68] sm:$0xff]  ;;  %v70_v4 = vld [vmem:[#allocation2 + $0x70] sm:$0xff] }
  0x34   :  { %704 = vst [vmem:[#allocation8 + $0x40] sm:$0xff] %v576_v51  ;;  %v578_v61 = vadd.f32 %v450_v52, %v66_v48  ;;  %v452_v62 = vmul.f32 %v324_v60, %v196_v59  ;;  %v197_v0 = vld [vmem:[#allocation5 + $0x68] sm:$0xff]  ;;  %v198_v5 = vld [vmem:[#allocation5 + $0x70] sm:$0xff]  ;;  %v71_v9 = vld [vmem:[#allocation2 + $0x78] sm:$0xff] }
  0x35   :  { %v325_v1 = vld [vmem:[#allocation7 + $0x68] sm:$0xff]  ;;  %705 = vst [vmem:[#allocation8 + $0x48] sm:$0xff] %v577_v56  ;;  %v579_v2 = vadd.f32 %v451_v57, %v67_v53  ;;  %v326_v6 = vld [vmem:[#allocation7 + $0x70] sm:$0xff]  ;;  %v199_v10 = vld [vmem:[#allocation5 + $0x78] sm:$0xff] }
  0x36   :  { %v453_v3 = vmul.f32 %v325_v1, %v197_v0  ;;  %706 = vst [vmem:[#allocation8 + $0x50] sm:$0xff] %v578_v61  ;;  %v580_v7 = vadd.f32 %v452_v62, %v68_v58  ;;  %v454_v8 = vmul.f32 %v326_v6, %v198_v5  ;;  %v327_v11 = vld [vmem:[#allocation7 + $0x78] sm:$0xff]  ;;  %v72_v14 = vld [vmem:[#allocation2 + $0x80] sm:$0xff]  ;;  %v73_v19 = vld [vmem:[#allocation2 + $0x88] sm:$0xff] }
  0x37   :  { %707 = vst [vmem:[#allocation8 + $0x58] sm:$0xff] %v579_v2  ;;  %v455_v13 = vmul.f32 %v327_v11, %v199_v10  ;;  %v200_v15 = vld [vmem:[#allocation5 + $0x80] sm:$0xff]  ;;  %v201_v20 = vld [vmem:[#allocation5 + $0x88] sm:$0xff]  ;;  %v74_v24 = vld [vmem:[#allocation2 + $0x90] sm:$0xff] }
  0x38   :  { %v581_v12 = vadd.f32 %v453_v3, %v69_v63  ;;  %v328_v16 = vld [vmem:[#allocation7 + $0x80] sm:$0xff]  ;;  %708 = vst [vmem:[#allocation8 + $0x60] sm:$0xff] %v580_v7  ;;  %v582_v17 = vadd.f32 %v454_v8, %v70_v4  ;;  %v329_v21 = vld [vmem:[#allocation7 + $0x88] sm:$0xff]  ;;  %v202_v25 = vld [vmem:[#allocation5 + $0x90] sm:$0xff] }
  0x39   :  { %v456_v18 = vmul.f32 %v328_v16, %v200_v15  ;;  %v583_v22 = vadd.f32 %v455_v13, %v71_v9  ;;  %v457_v23 = vmul.f32 %v329_v21, %v201_v20  ;;  %v330_v26 = vld [vmem:[#allocation7 + $0x90] sm:$0xff]  ;;  %v75_v29 = vld [vmem:[#allocation2 + $0x98] sm:$0xff]  ;;  %v76_v34 = vld [vmem:[#allocation2 + $0xa0] sm:$0xff] }
  0x3a   :  { %709 = vst [vmem:[#allocation8 + $0x68] sm:$0xff] %v581_v12  ;;  %710 = vst [vmem:[#allocation8 + $0x70] sm:$0xff] %v582_v17  ;;  %v458_v28 = vmul.f32 %v330_v26, %v202_v25  ;;  %v203_v30 = vld [vmem:[#allocation5 + $0x98] sm:$0xff]  ;;  %v204_v35 = vld [vmem:[#allocation5 + $0xa0] sm:$0xff] }
  0x3b   :  { %v584_v27 = vadd.f32 %v456_v18, %v72_v14  ;;  %v331_v31 = vld [vmem:[#allocation7 + $0x98] sm:$0xff]  ;;  %711 = vst [vmem:[#allocation8 + $0x78] sm:$0xff] %v583_v22  ;;  %v585_v32 = vadd.f32 %v457_v23, %v73_v19  ;;  %v332_v36 = vld [vmem:[#allocation7 + $0xa0] sm:$0xff]  ;;  %v77_v39 = vld [vmem:[#allocation2 + $0xa8] sm:$0xff] }
  0x3c   :  { %v459_v33 = vmul.f32 %v331_v31, %v203_v30  ;;  %v586_v37 = vadd.f32 %v458_v28, %v74_v24  ;;  %v460_v38 = vmul.f32 %v332_v36, %v204_v35  ;;  %v205_v40 = vld [vmem:[#allocation5 + $0xa8] sm:$0xff]  ;;  %v78_v44 = vld [vmem:[#allocation2 + $0xb0] sm:$0xff]  ;;  %v79_v49 = vld [vmem:[#allocation2 + $0xb8] sm:$0xff] }
  0x3d   :  { %712 = vst [vmem:[#allocation8 + $0x80] sm:$0xff] %v584_v27  ;;  %v333_v41 = vld [vmem:[#allocation7 + $0xa8] sm:$0xff]  ;;  %713 = vst [vmem:[#allocation8 + $0x88] sm:$0xff] %v585_v32  ;;  %v206_v45 = vld [vmem:[#allocation5 + $0xb0] sm:$0xff] }
  0x3e   :  { %v587_v42 = vadd.f32 %v459_v33, %v75_v29  ;;  %v461_v43 = vmul.f32 %v333_v41, %v205_v40  ;;  %v334_v46 = vld [vmem:[#allocation7 + $0xb0] sm:$0xff]  ;;  %714 = vst [vmem:[#allocation8 + $0x90] sm:$0xff] %v586_v37  ;;  %v588_v47 = vadd.f32 %v460_v38, %v76_v34  ;;  %v207_v50 = vld [vmem:[#allocation5 + $0xb8] sm:$0xff]  ;;  %v80_v54 = vld [vmem:[#allocation2 + $0xc0] sm:$0xff] }
  0x3f   :  { %v462_v48 = vmul.f32 %v334_v46, %v206_v45  ;;  %v335_v51 = vld [vmem:[#allocation7 + $0xb8] sm:$0xff]  ;;  %v208_v55 = vld [vmem:[#allocation5 + $0xc0] sm:$0xff]  ;;  %v81_v59 = vld [vmem:[#allocation2 + $0xc8] sm:$0xff] }
  0x40   :  { %715 = vst [vmem:[#allocation8 + $0x98] sm:$0xff] %v587_v42  ;;  %v589_v52 = vadd.f32 %v461_v43, %v77_v39  ;;  %v463_v53 = vmul.f32 %v335_v51, %v207_v50  ;;  %v336_v56 = vld [vmem:[#allocation7 + $0xc0] sm:$0xff]  ;;  %716 = vst [vmem:[#allocation8 + $0xa0] sm:$0xff] %v588_v47  ;;  %v209_v60 = vld [vmem:[#allocation5 + $0xc8] sm:$0xff] }
  0x41   :  { %v590_v57 = vadd.f32 %v462_v48, %v78_v44  ;;  %v464_v58 = vmul.f32 %v336_v56, %v208_v55  ;;  %v337_v61 = vld [vmem:[#allocation7 + $0xc8] sm:$0xff]  ;;  %v82_v0 = vld [vmem:[#allocation2 + $0xd0] sm:$0xff]  ;;  %v83_v5 = vld [vmem:[#allocation2 + $0xd8] sm:$0xff] }
  0x42   :  { %717 = vst [vmem:[#allocation8 + $0xa8] sm:$0xff] %v589_v52  ;;  %v591_v62 = vadd.f32 %v463_v53, %v79_v49  ;;  %v465_v63 = vmul.f32 %v337_v61, %v209_v60  ;;  %v210_v1 = vld [vmem:[#allocation5 + $0xd0] sm:$0xff]  ;;  %v211_v6 = vld [vmem:[#allocation5 + $0xd8] sm:$0xff]  ;;  %v84_v10 = vld [vmem:[#allocation2 + $0xe0] sm:$0xff] }
  0x43   :  { %v338_v2 = vld [vmem:[#allocation7 + $0xd0] sm:$0xff]  ;;  %718 = vst [vmem:[#allocation8 + $0xb0] sm:$0xff] %v590_v57  ;;  %v592_v3 = vadd.f32 %v464_v58, %v80_v54  ;;  %v339_v7 = vld [vmem:[#allocation7 + $0xd8] sm:$0xff]  ;;  %v212_v11 = vld [vmem:[#allocation5 + $0xe0] sm:$0xff] }
  0x44   :  { %v466_v4 = vmul.f32 %v338_v2, %v210_v1  ;;  %719 = vst [vmem:[#allocation8 + $0xb8] sm:$0xff] %v591_v62  ;;  %v593_v8 = vadd.f32 %v465_v63, %v81_v59  ;;  %v467_v9 = vmul.f32 %v339_v7, %v211_v6  ;;  %v340_v12 = vld [vmem:[#allocation7 + $0xe0] sm:$0xff]  ;;  %v85_v15 = vld [vmem:[#allocation2 + $0xe8] sm:$0xff]  ;;  %v86_v20 = vld [vmem:[#allocation2 + $0xf0] sm:$0xff] }
  0x45   :  { %720 = vst [vmem:[#allocation8 + $0xc0] sm:$0xff] %v592_v3  ;;  %v468_v14 = vmul.f32 %v340_v12, %v212_v11  ;;  %v213_v16 = vld [vmem:[#allocation5 + $0xe8] sm:$0xff]  ;;  %v214_v21 = vld [vmem:[#allocation5 + $0xf0] sm:$0xff]  ;;  %v87_v25 = vld [vmem:[#allocation2 + $0xf8] sm:$0xff] }
  0x46   :  { %v594_v13 = vadd.f32 %v466_v4, %v82_v0  ;;  %v341_v17 = vld [vmem:[#allocation7 + $0xe8] sm:$0xff]  ;;  %721 = vst [vmem:[#allocation8 + $0xc8] sm:$0xff] %v593_v8  ;;  %v595_v18 = vadd.f32 %v467_v9, %v83_v5  ;;  %v342_v22 = vld [vmem:[#allocation7 + $0xf0] sm:$0xff]  ;;  %v215_v26 = vld [vmem:[#allocation5 + $0xf8] sm:$0xff] }
  0x47   :  { %v469_v19 = vmul.f32 %v341_v17, %v213_v16  ;;  %v596_v23 = vadd.f32 %v468_v14, %v84_v10  ;;  %v470_v24 = vmul.f32 %v342_v22, %v214_v21  ;;  %v343_v27 = vld [vmem:[#allocation7 + $0xf8] sm:$0xff]  ;;  %v88_v30 = vld [vmem:[#allocation2 + $0x100] sm:$0xff]  ;;  %v89_v35 = vld [vmem:[#allocation2 + $0x108] sm:$0xff] }
  0x48   :  { %722 = vst [vmem:[#allocation8 + $0xd0] sm:$0xff] %v594_v13  ;;  %723 = vst [vmem:[#allocation8 + $0xd8] sm:$0xff] %v595_v18  ;;  %v471_v29 = vmul.f32 %v343_v27, %v215_v26  ;;  %v216_v31 = vld [vmem:[#allocation5 + $0x100] sm:$0xff]  ;;  %v217_v36 = vld [vmem:[#allocation5 + $0x108] sm:$0xff] }
  0x49   :  { %v597_v28 = vadd.f32 %v469_v19, %v85_v15  ;;  %v344_v32 = vld [vmem:[#allocation7 + $0x100] sm:$0xff]  ;;  %724 = vst [vmem:[#allocation8 + $0xe0] sm:$0xff] %v596_v23  ;;  %v598_v33 = vadd.f32 %v470_v24, %v86_v20  ;;  %v345_v37 = vld [vmem:[#allocation7 + $0x108] sm:$0xff]  ;;  %v90_v40 = vld [vmem:[#allocation2 + $0x110] sm:$0xff] }
  0x4a   :  { %v472_v34 = vmul.f32 %v344_v32, %v216_v31  ;;  %v599_v38 = vadd.f32 %v471_v29, %v87_v25  ;;  %v473_v39 = vmul.f32 %v345_v37, %v217_v36  ;;  %v218_v41 = vld [vmem:[#allocation5 + $0x110] sm:$0xff]  ;;  %v91_v45 = vld [vmem:[#allocation2 + $0x118] sm:$0xff]  ;;  %v92_v50 = vld [vmem:[#allocation2 + $0x120] sm:$0xff] }
  0x4b   :  { %725 = vst [vmem:[#allocation8 + $0xe8] sm:$0xff] %v597_v28  ;;  %v346_v42 = vld [vmem:[#allocation7 + $0x110] sm:$0xff]  ;;  %726 = vst [vmem:[#allocation8 + $0xf0] sm:$0xff] %v598_v33  ;;  %v219_v46 = vld [vmem:[#allocation5 + $0x118] sm:$0xff] }
  0x4c   :  { %v600_v43 = vadd.f32 %v472_v34, %v88_v30  ;;  %v474_v44 = vmul.f32 %v346_v42, %v218_v41  ;;  %v347_v47 = vld [vmem:[#allocation7 + $0x118] sm:$0xff]  ;;  %727 = vst [vmem:[#allocation8 + $0xf8] sm:$0xff] %v599_v38  ;;  %v601_v48 = vadd.f32 %v473_v39, %v89_v35  ;;  %v220_v51 = vld [vmem:[#allocation5 + $0x120] sm:$0xff]  ;;  %v93_v55 = vld [vmem:[#allocation2 + $0x128] sm:$0xff] }
  0x4d   :  { %v475_v49 = vmul.f32 %v347_v47, %v219_v46  ;;  %v348_v52 = vld [vmem:[#allocation7 + $0x120] sm:$0xff]  ;;  %v221_v56 = vld [vmem:[#allocation5 + $0x128] sm:$0xff]  ;;  %v94_v60 = vld [vmem:[#allocation2 + $0x130] sm:$0xff] }
  0x4e   :  { %728 = vst [vmem:[#allocation8 + $0x100] sm:$0xff] %v600_v43  ;;  %v602_v53 = vadd.f32 %v474_v44, %v90_v40  ;;  %v476_v54 = vmul.f32 %v348_v52, %v220_v51  ;;  %v349_v57 = vld [vmem:[#allocation7 + $0x128] sm:$0xff]  ;;  %729 = vst [vmem:[#allocation8 + $0x108] sm:$0xff] %v601_v48  ;;  %v222_v61 = vld [vmem:[#allocation5 + $0x130] sm:$0xff] }
  0x4f   :  { %v603_v58 = vadd.f32 %v475_v49, %v91_v45  ;;  %v477_v59 = vmul.f32 %v349_v57, %v221_v56  ;;  %v350_v62 = vld [vmem:[#allocation7 + $0x130] sm:$0xff]  ;;  %v95_v1 = vld [vmem:[#allocation2 + $0x138] sm:$0xff]  ;;  %v96_v6 = vld [vmem:[#allocation2 + $0x140] sm:$0xff] }
  0x50   :  { %730 = vst [vmem:[#allocation8 + $0x110] sm:$0xff] %v602_v53  ;;  %v604_v63 = vadd.f32 %v476_v54, %v92_v50  ;;  %v478_v0 = vmul.f32 %v350_v62, %v222_v61  ;;  %v223_v2 = vld [vmem:[#allocation5 + $0x138] sm:$0xff]  ;;  %v224_v7 = vld [vmem:[#allocation5 + $0x140] sm:$0xff]  ;;  %v97_v11 = vld [vmem:[#allocation2 + $0x148] sm:$0xff] }
  0x51   :  { %v351_v3 = vld [vmem:[#allocation7 + $0x138] sm:$0xff]  ;;  %731 = vst [vmem:[#allocation8 + $0x118] sm:$0xff] %v603_v58  ;;  %v605_v4 = vadd.f32 %v477_v59, %v93_v55  ;;  %v352_v8 = vld [vmem:[#allocation7 + $0x140] sm:$0xff]  ;;  %v225_v12 = vld [vmem:[#allocation5 + $0x148] sm:$0xff] }
  0x52   :  { %v479_v5 = vmul.f32 %v351_v3, %v223_v2  ;;  %732 = vst [vmem:[#allocation8 + $0x120] sm:$0xff] %v604_v63  ;;  %v606_v9 = vadd.f32 %v478_v0, %v94_v60  ;;  %v480_v10 = vmul.f32 %v352_v8, %v224_v7  ;;  %v353_v13 = vld [vmem:[#allocation7 + $0x148] sm:$0xff]  ;;  %v98_v16 = vld [vmem:[#allocation2 + $0x150] sm:$0xff]  ;;  %v99_v21 = vld [vmem:[#allocation2 + $0x158] sm:$0xff] }
  0x53   :  { %733 = vst [vmem:[#allocation8 + $0x128] sm:$0xff] %v605_v4  ;;  %v481_v15 = vmul.f32 %v353_v13, %v225_v12  ;;  %v226_v17 = vld [vmem:[#allocation5 + $0x150] sm:$0xff]  ;;  %v227_v22 = vld [vmem:[#allocation5 + $0x158] sm:$0xff]  ;;  %v100_v26 = vld [vmem:[#allocation2 + $0x160] sm:$0xff] }
  0x54   :  { %v607_v14 = vadd.f32 %v479_v5, %v95_v1  ;;  %v354_v18 = vld [vmem:[#allocation7 + $0x150] sm:$0xff]  ;;  %734 = vst [vmem:[#allocation8 + $0x130] sm:$0xff] %v606_v9  ;;  %v608_v19 = vadd.f32 %v480_v10, %v96_v6  ;;  %v355_v23 = vld [vmem:[#allocation7 + $0x158] sm:$0xff]  ;;  %v228_v27 = vld [vmem:[#allocation5 + $0x160] sm:$0xff] }
  0x55   :  { %v482_v20 = vmul.f32 %v354_v18, %v226_v17  ;;  %v609_v24 = vadd.f32 %v481_v15, %v97_v11  ;;  %v483_v25 = vmul.f32 %v355_v23, %v227_v22  ;;  %v356_v28 = vld [vmem:[#allocation7 + $0x160] sm:$0xff]  ;;  %v101_v31 = vld [vmem:[#allocation2 + $0x168] sm:$0xff]  ;;  %v102_v36 = vld [vmem:[#allocation2 + $0x170] sm:$0xff] }
  0x56   :  { %735 = vst [vmem:[#allocation8 + $0x138] sm:$0xff] %v607_v14  ;;  %736 = vst [vmem:[#allocation8 + $0x140] sm:$0xff] %v608_v19  ;;  %v484_v30 = vmul.f32 %v356_v28, %v228_v27  ;;  %v229_v32 = vld [vmem:[#allocation5 + $0x168] sm:$0xff]  ;;  %v230_v37 = vld [vmem:[#allocation5 + $0x170] sm:$0xff] }
  0x57   :  { %v610_v29 = vadd.f32 %v482_v20, %v98_v16  ;;  %v357_v33 = vld [vmem:[#allocation7 + $0x168] sm:$0xff]  ;;  %737 = vst [vmem:[#allocation8 + $0x148] sm:$0xff] %v609_v24  ;;  %v611_v34 = vadd.f32 %v483_v25, %v99_v21  ;;  %v358_v38 = vld [vmem:[#allocation7 + $0x170] sm:$0xff]  ;;  %v103_v41 = vld [vmem:[#allocation2 + $0x178] sm:$0xff] }
  0x58   :  { %v485_v35 = vmul.f32 %v357_v33, %v229_v32  ;;  %v612_v39 = vadd.f32 %v484_v30, %v100_v26  ;;  %v486_v40 = vmul.f32 %v358_v38, %v230_v37  ;;  %v231_v42 = vld [vmem:[#allocation5 + $0x178] sm:$0xff]  ;;  %v104_v46 = vld [vmem:[#allocation2 + $0x180] sm:$0xff]  ;;  %v105_v51 = vld [vmem:[#allocation2 + $0x188] sm:$0xff] }
  0x59   :  { %738 = vst [vmem:[#allocation8 + $0x150] sm:$0xff] %v610_v29  ;;  %v359_v43 = vld [vmem:[#allocation7 + $0x178] sm:$0xff]  ;;  %739 = vst [vmem:[#allocation8 + $0x158] sm:$0xff] %v611_v34  ;;  %v232_v47 = vld [vmem:[#allocation5 + $0x180] sm:$0xff] }
  0x5a   :  { %v613_v44 = vadd.f32 %v485_v35, %v101_v31  ;;  %v487_v45 = vmul.f32 %v359_v43, %v231_v42  ;;  %v360_v48 = vld [vmem:[#allocation7 + $0x180] sm:$0xff]  ;;  %740 = vst [vmem:[#allocation8 + $0x160] sm:$0xff] %v612_v39  ;;  %v614_v49 = vadd.f32 %v486_v40, %v102_v36  ;;  %v233_v52 = vld [vmem:[#allocation5 + $0x188] sm:$0xff]  ;;  %v106_v56 = vld [vmem:[#allocation2 + $0x190] sm:$0xff] }
  0x5b   :  { %v488_v50 = vmul.f32 %v360_v48, %v232_v47  ;;  %v361_v53 = vld [vmem:[#allocation7 + $0x188] sm:$0xff]  ;;  %v234_v57 = vld [vmem:[#allocation5 + $0x190] sm:$0xff]  ;;  %v107_v61 = vld [vmem:[#allocation2 + $0x198] sm:$0xff] }
  0x5c   :  { %741 = vst [vmem:[#allocation8 + $0x168] sm:$0xff] %v613_v44  ;;  %v615_v54 = vadd.f32 %v487_v45, %v103_v41  ;;  %v489_v55 = vmul.f32 %v361_v53, %v233_v52  ;;  %v362_v58 = vld [vmem:[#allocation7 + $0x190] sm:$0xff]  ;;  %742 = vst [vmem:[#allocation8 + $0x170] sm:$0xff] %v614_v49  ;;  %v235_v62 = vld [vmem:[#allocation5 + $0x198] sm:$0xff] }
  0x5d   :  { %v616_v59 = vadd.f32 %v488_v50, %v104_v46  ;;  %v490_v60 = vmul.f32 %v362_v58, %v234_v57  ;;  %v363_v63 = vld [vmem:[#allocation7 + $0x198] sm:$0xff]  ;;  %v108_v2 = vld [vmem:[#allocation2 + $0x1a0] sm:$0xff]  ;;  %v109_v7 = vld [vmem:[#allocation2 + $0x1a8] sm:$0xff] }
  0x5e   :  { %743 = vst [vmem:[#allocation8 + $0x178] sm:$0xff] %v615_v54  ;;  %v617_v0 = vadd.f32 %v489_v55, %v105_v51  ;;  %v491_v1 = vmul.f32 %v363_v63, %v235_v62  ;;  %v236_v3 = vld [vmem:[#allocation5 + $0x1a0] sm:$0xff]  ;;  %v237_v8 = vld [vmem:[#allocation5 + $0x1a8] sm:$0xff]  ;;  %v110_v12 = vld [vmem:[#allocation2 + $0x1b0] sm:$0xff] }
  0x5f   :  { %v364_v4 = vld [vmem:[#allocation7 + $0x1a0] sm:$0xff]  ;;  %744 = vst [vmem:[#allocation8 + $0x180] sm:$0xff] %v616_v59  ;;  %v618_v5 = vadd.f32 %v490_v60, %v106_v56  ;;  %v365_v9 = vld [vmem:[#allocation7 + $0x1a8] sm:$0xff]  ;;  %v238_v13 = vld [vmem:[#allocation5 + $0x1b0] sm:$0xff] }
  0x60   :  { %v492_v6 = vmul.f32 %v364_v4, %v236_v3  ;;  %745 = vst [vmem:[#allocation8 + $0x188] sm:$0xff] %v617_v0  ;;  %v619_v10 = vadd.f32 %v491_v1, %v107_v61  ;;  %v493_v11 = vmul.f32 %v365_v9, %v237_v8  ;;  %v366_v14 = vld [vmem:[#allocation7 + $0x1b0] sm:$0xff]  ;;  %v111_v17 = vld [vmem:[#allocation2 + $0x1b8] sm:$0xff]  ;;  %v112_v22 = vld [vmem:[#allocation2 + $0x1c0] sm:$0xff] }
  0x61   :  { %746 = vst [vmem:[#allocation8 + $0x190] sm:$0xff] %v618_v5  ;;  %v494_v16 = vmul.f32 %v366_v14, %v238_v13  ;;  %v239_v18 = vld [vmem:[#allocation5 + $0x1b8] sm:$0xff]  ;;  %v240_v23 = vld [vmem:[#allocation5 + $0x1c0] sm:$0xff]  ;;  %v113_v27 = vld [vmem:[#allocation2 + $0x1c8] sm:$0xff] }
  0x62   :  { %v620_v15 = vadd.f32 %v492_v6, %v108_v2  ;;  %v367_v19 = vld [vmem:[#allocation7 + $0x1b8] sm:$0xff]  ;;  %747 = vst [vmem:[#allocation8 + $0x198] sm:$0xff] %v619_v10  ;;  %v621_v20 = vadd.f32 %v493_v11, %v109_v7  ;;  %v368_v24 = vld [vmem:[#allocation7 + $0x1c0] sm:$0xff]  ;;  %v241_v28 = vld [vmem:[#allocation5 + $0x1c8] sm:$0xff] }
  0x63   :  { %v495_v21 = vmul.f32 %v367_v19, %v239_v18  ;;  %v622_v25 = vadd.f32 %v494_v16, %v110_v12  ;;  %v496_v26 = vmul.f32 %v368_v24, %v240_v23  ;;  %v369_v29 = vld [vmem:[#allocation7 + $0x1c8] sm:$0xff]  ;;  %v114_v32 = vld [vmem:[#allocation2 + $0x1d0] sm:$0xff]  ;;  %v115_v37 = vld [vmem:[#allocation2 + $0x1d8] sm:$0xff] }
  0x64   :  { %748 = vst [vmem:[#allocation8 + $0x1a0] sm:$0xff] %v620_v15  ;;  %749 = vst [vmem:[#allocation8 + $0x1a8] sm:$0xff] %v621_v20  ;;  %v497_v31 = vmul.f32 %v369_v29, %v241_v28  ;;  %v242_v33 = vld [vmem:[#allocation5 + $0x1d0] sm:$0xff]  ;;  %v243_v38 = vld [vmem:[#allocation5 + $0x1d8] sm:$0xff] }
  0x65   :  { %v623_v30 = vadd.f32 %v495_v21, %v111_v17  ;;  %v370_v34 = vld [vmem:[#allocation7 + $0x1d0] sm:$0xff]  ;;  %750 = vst [vmem:[#allocation8 + $0x1b0] sm:$0xff] %v622_v25  ;;  %v624_v35 = vadd.f32 %v496_v26, %v112_v22  ;;  %v371_v39 = vld [vmem:[#allocation7 + $0x1d8] sm:$0xff]  ;;  %v116_v42 = vld [vmem:[#allocation2 + $0x1e0] sm:$0xff] }
  0x66   :  { %v498_v36 = vmul.f32 %v370_v34, %v242_v33  ;;  %v625_v40 = vadd.f32 %v497_v31, %v113_v27  ;;  %v499_v41 = vmul.f32 %v371_v39, %v243_v38  ;;  %v244_v43 = vld [vmem:[#allocation5 + $0x1e0] sm:$0xff]  ;;  %v117_v47 = vld [vmem:[#allocation2 + $0x1e8] sm:$0xff]  ;;  %v118_v52 = vld [vmem:[#allocation2 + $0x1f0] sm:$0xff] }
  0x67   :  { %751 = vst [vmem:[#allocation8 + $0x1b8] sm:$0xff] %v623_v30  ;;  %v372_v44 = vld [vmem:[#allocation7 + $0x1e0] sm:$0xff]  ;;  %752 = vst [vmem:[#allocation8 + $0x1c0] sm:$0xff] %v624_v35  ;;  %v245_v48 = vld [vmem:[#allocation5 + $0x1e8] sm:$0xff] }
  0x68   :  { %v626_v45 = vadd.f32 %v498_v36, %v114_v32  ;;  %v500_v46 = vmul.f32 %v372_v44, %v244_v43  ;;  %v373_v49 = vld [vmem:[#allocation7 + $0x1e8] sm:$0xff]  ;;  %753 = vst [vmem:[#allocation8 + $0x1c8] sm:$0xff] %v625_v40  ;;  %v627_v50 = vadd.f32 %v499_v41, %v115_v37  ;;  %v246_v53 = vld [vmem:[#allocation5 + $0x1f0] sm:$0xff]  ;;  %v119_v57 = vld [vmem:[#allocation2 + $0x1f8] sm:$0xff] }
  0x69   :  { %v501_v51 = vmul.f32 %v373_v49, %v245_v48  ;;  %v374_v54 = vld [vmem:[#allocation7 + $0x1f0] sm:$0xff]  ;;  %v247_v58 = vld [vmem:[#allocation5 + $0x1f8] sm:$0xff]  ;;  %v120_v62 = vld [vmem:[#allocation2 + $0x200] sm:$0xff] }
  0x6a   :  { %754 = vst [vmem:[#allocation8 + $0x1d0] sm:$0xff] %v626_v45  ;;  %v628_v55 = vadd.f32 %v500_v46, %v116_v42  ;;  %v502_v56 = vmul.f32 %v374_v54, %v246_v53  ;;  %v375_v59 = vld [vmem:[#allocation7 + $0x1f8] sm:$0xff]  ;;  %755 = vst [vmem:[#allocation8 + $0x1d8] sm:$0xff] %v627_v50  ;;  %v248_v63 = vld [vmem:[#allocation5 + $0x200] sm:$0xff] }
  0x6b   :  { %v629_v60 = vadd.f32 %v501_v51, %v117_v47  ;;  %v503_v61 = vmul.f32 %v375_v59, %v247_v58  ;;  %v376_v0 = vld [vmem:[#allocation7 + $0x200] sm:$0xff]  ;;  %v121_v3 = vld [vmem:[#allocation2 + $0x208] sm:$0xff]  ;;  %v122_v8 = vld [vmem:[#allocation2 + $0x210] sm:$0xff] }
  0x6c   :  { %756 = vst [vmem:[#allocation8 + $0x1e0] sm:$0xff] %v628_v55  ;;  %v630_v1 = vadd.f32 %v502_v56, %v118_v52  ;;  %v504_v2 = vmul.f32 %v376_v0, %v248_v63  ;;  %v249_v4 = vld [vmem:[#allocation5 + $0x208] sm:$0xff]  ;;  %v250_v9 = vld [vmem:[#allocation5 + $0x210] sm:$0xff]  ;;  %v123_v13 = vld [vmem:[#allocation2 + $0x218] sm:$0xff] }
  0x6d   :  { %v377_v5 = vld [vmem:[#allocation7 + $0x208] sm:$0xff]  ;;  %757 = vst [vmem:[#allocation8 + $0x1e8] sm:$0xff] %v629_v60  ;;  %v631_v6 = vadd.f32 %v503_v61, %v119_v57  ;;  %v378_v10 = vld [vmem:[#allocation7 + $0x210] sm:$0xff]  ;;  %v251_v14 = vld [vmem:[#allocation5 + $0x218] sm:$0xff] }
  0x6e   :  { %v505_v7 = vmul.f32 %v377_v5, %v249_v4  ;;  %758 = vst [vmem:[#allocation8 + $0x1f0] sm:$0xff] %v630_v1  ;;  %v632_v11 = vadd.f32 %v504_v2, %v120_v62  ;;  %v506_v12 = vmul.f32 %v378_v10, %v250_v9  ;;  %v379_v15 = vld [vmem:[#allocation7 + $0x218] sm:$0xff]  ;;  %v124_v18 = vld [vmem:[#allocation2 + $0x220] sm:$0xff]  ;;  %v125_v23 = vld [vmem:[#allocation2 + $0x228] sm:$0xff] }
  0x6f   :  { %759 = vst [vmem:[#allocation8 + $0x1f8] sm:$0xff] %v631_v6  ;;  %v507_v17 = vmul.f32 %v379_v15, %v251_v14  ;;  %v252_v19 = vld [vmem:[#allocation5 + $0x220] sm:$0xff]  ;;  %v253_v24 = vld [vmem:[#allocation5 + $0x228] sm:$0xff]  ;;  %v126_v28 = vld [vmem:[#allocation2 + $0x230] sm:$0xff] }
  0x70   :  { %v633_v16 = vadd.f32 %v505_v7, %v121_v3  ;;  %v380_v20 = vld [vmem:[#allocation7 + $0x220] sm:$0xff]  ;;  %760 = vst [vmem:[#allocation8 + $0x200] sm:$0xff] %v632_v11  ;;  %v634_v21 = vadd.f32 %v506_v12, %v122_v8  ;;  %v381_v25 = vld [vmem:[#allocation7 + $0x228] sm:$0xff]  ;;  %v254_v29 = vld [vmem:[#allocation5 + $0x230] sm:$0xff] }
  0x71   :  { %v508_v22 = vmul.f32 %v380_v20, %v252_v19  ;;  %v635_v26 = vadd.f32 %v507_v17, %v123_v13  ;;  %v509_v27 = vmul.f32 %v381_v25, %v253_v24  ;;  %v382_v30 = vld [vmem:[#allocation7 + $0x230] sm:$0xff]  ;;  %v127_v33 = vld [vmem:[#allocation2 + $0x238] sm:$0xff]  ;;  %v128_v38 = vld [vmem:[#allocation2 + $0x240] sm:$0xff] }
  0x72   :  { %761 = vst [vmem:[#allocation8 + $0x208] sm:$0xff] %v633_v16  ;;  %762 = vst [vmem:[#allocation8 + $0x210] sm:$0xff] %v634_v21  ;;  %v510_v32 = vmul.f32 %v382_v30, %v254_v29  ;;  %v255_v34 = vld [vmem:[#allocation5 + $0x238] sm:$0xff]  ;;  %v256_v39 = vld [vmem:[#allocation5 + $0x240] sm:$0xff] }
  0x73   :  { %v636_v31 = vadd.f32 %v508_v22, %v124_v18  ;;  %v383_v35 = vld [vmem:[#allocation7 + $0x238] sm:$0xff]  ;;  %763 = vst [vmem:[#allocation8 + $0x218] sm:$0xff] %v635_v26  ;;  %v637_v36 = vadd.f32 %v509_v27, %v125_v23  ;;  %v384_v40 = vld [vmem:[#allocation7 + $0x240] sm:$0xff]  ;;  %v129_v43 = vld [vmem:[#allocation2 + $0x248] sm:$0xff] }
  0x74   :  { %v511_v37 = vmul.f32 %v383_v35, %v255_v34  ;;  %v638_v41 = vadd.f32 %v510_v32, %v126_v28  ;;  %v512_v42 = vmul.f32 %v384_v40, %v256_v39  ;;  %v257_v44 = vld [vmem:[#allocation5 + $0x248] sm:$0xff]  ;;  %v130_v48 = vld [vmem:[#allocation2 + $0x250] sm:$0xff]  ;;  %v131_v53 = vld [vmem:[#allocation2 + $0x258] sm:$0xff] }
  0x75   :  { %764 = vst [vmem:[#allocation8 + $0x220] sm:$0xff] %v636_v31  ;;  %v385_v45 = vld [vmem:[#allocation7 + $0x248] sm:$0xff]  ;;  %765 = vst [vmem:[#allocation8 + $0x228] sm:$0xff] %v637_v36  ;;  %v258_v49 = vld [vmem:[#allocation5 + $0x250] sm:$0xff] }
  0x76   :  { %v639_v46 = vadd.f32 %v511_v37, %v127_v33  ;;  %v513_v47 = vmul.f32 %v385_v45, %v257_v44  ;;  %v386_v50 = vld [vmem:[#allocation7 + $0x250] sm:$0xff]  ;;  %766 = vst [vmem:[#allocation8 + $0x230] sm:$0xff] %v638_v41  ;;  %v640_v51 = vadd.f32 %v512_v42, %v128_v38  ;;  %v259_v54 = vld [vmem:[#allocation5 + $0x258] sm:$0xff]  ;;  %v132_v58 = vld [vmem:[#allocation2 + $0x260] sm:$0xff] }
  0x77   :  { %v514_v52 = vmul.f32 %v386_v50, %v258_v49  ;;  %v387_v55 = vld [vmem:[#allocation7 + $0x258] sm:$0xff]  ;;  %v260_v59 = vld [vmem:[#allocation5 + $0x260] sm:$0xff]  ;;  %v133_v63 = vld [vmem:[#allocation2 + $0x268] sm:$0xff] }
  0x78   :  { %767 = vst [vmem:[#allocation8 + $0x238] sm:$0xff] %v639_v46  ;;  %v641_v56 = vadd.f32 %v513_v47, %v129_v43  ;;  %v515_v57 = vmul.f32 %v387_v55, %v259_v54  ;;  %v388_v60 = vld [vmem:[#allocation7 + $0x260] sm:$0xff]  ;;  %768 = vst [vmem:[#allocation8 + $0x240] sm:$0xff] %v640_v51  ;;  %v261_v0 = vld [vmem:[#allocation5 + $0x268] sm:$0xff] }
  0x79   :  { %v642_v61 = vadd.f32 %v514_v52, %v130_v48  ;;  %v516_v62 = vmul.f32 %v388_v60, %v260_v59  ;;  %v389_v1 = vld [vmem:[#allocation7 + $0x268] sm:$0xff]  ;;  %v134_v4 = vld [vmem:[#allocation2 + $0x270] sm:$0xff]  ;;  %v135_v9 = vld [vmem:[#allocation2 + $0x278] sm:$0xff] }
  0x7a   :  { %769 = vst [vmem:[#allocation8 + $0x248] sm:$0xff] %v641_v56  ;;  %v643_v2 = vadd.f32 %v515_v57, %v131_v53  ;;  %v517_v3 = vmul.f32 %v389_v1, %v261_v0  ;;  %v262_v5 = vld [vmem:[#allocation5 + $0x270] sm:$0xff]  ;;  %v263_v10 = vld [vmem:[#allocation5 + $0x278] sm:$0xff]  ;;  %v136_v14 = vld [vmem:[#allocation2 + $0x280] sm:$0xff] }
  0x7b   :  { %v390_v6 = vld [vmem:[#allocation7 + $0x270] sm:$0xff]  ;;  %770 = vst [vmem:[#allocation8 + $0x250] sm:$0xff] %v642_v61  ;;  %v644_v7 = vadd.f32 %v516_v62, %v132_v58  ;;  %v391_v11 = vld [vmem:[#allocation7 + $0x278] sm:$0xff]  ;;  %v264_v15 = vld [vmem:[#allocation5 + $0x280] sm:$0xff] }
  0x7c   :  { %v518_v8 = vmul.f32 %v390_v6, %v262_v5  ;;  %771 = vst [vmem:[#allocation8 + $0x258] sm:$0xff] %v643_v2  ;;  %v645_v12 = vadd.f32 %v517_v3, %v133_v63  ;;  %v519_v13 = vmul.f32 %v391_v11, %v263_v10  ;;  %v392_v16 = vld [vmem:[#allocation7 + $0x280] sm:$0xff]  ;;  %v137_v19 = vld [vmem:[#allocation2 + $0x288] sm:$0xff]  ;;  %v138_v24 = vld [vmem:[#allocation2 + $0x290] sm:$0xff] }
  0x7d   :  { %772 = vst [vmem:[#allocation8 + $0x260] sm:$0xff] %v644_v7  ;;  %v520_v18 = vmul.f32 %v392_v16, %v264_v15  ;;  %v265_v20 = vld [vmem:[#allocation5 + $0x288] sm:$0xff]  ;;  %v266_v25 = vld [vmem:[#allocation5 + $0x290] sm:$0xff]  ;;  %v139_v29 = vld [vmem:[#allocation2 + $0x298] sm:$0xff] }
  0x7e   :  { %v646_v17 = vadd.f32 %v518_v8, %v134_v4  ;;  %v393_v21 = vld [vmem:[#allocation7 + $0x288] sm:$0xff]  ;;  %773 = vst [vmem:[#allocation8 + $0x268] sm:$0xff] %v645_v12  ;;  %v647_v22 = vadd.f32 %v519_v13, %v135_v9  ;;  %v394_v26 = vld [vmem:[#allocation7 + $0x290] sm:$0xff]  ;;  %v267_v30 = vld [vmem:[#allocation5 + $0x298] sm:$0xff] }
  0x7f   :  { %v521_v23 = vmul.f32 %v393_v21, %v265_v20  ;;  %v648_v27 = vadd.f32 %v520_v18, %v136_v14  ;;  %v522_v28 = vmul.f32 %v394_v26, %v266_v25  ;;  %v395_v31 = vld [vmem:[#allocation7 + $0x298] sm:$0xff]  ;;  %v140_v34 = vld [vmem:[#allocation2 + $0x2a0] sm:$0xff]  ;;  %v141_v39 = vld [vmem:[#allocation2 + $0x2a8] sm:$0xff] }
  0x80   :  { %774 = vst [vmem:[#allocation8 + $0x270] sm:$0xff] %v646_v17  ;;  %775 = vst [vmem:[#allocation8 + $0x278] sm:$0xff] %v647_v22  ;;  %v523_v33 = vmul.f32 %v395_v31, %v267_v30  ;;  %v268_v35 = vld [vmem:[#allocation5 + $0x2a0] sm:$0xff]  ;;  %v269_v40 = vld [vmem:[#allocation5 + $0x2a8] sm:$0xff] }
  0x81   :  { %v649_v32 = vadd.f32 %v521_v23, %v137_v19  ;;  %v396_v36 = vld [vmem:[#allocation7 + $0x2a0] sm:$0xff]  ;;  %776 = vst [vmem:[#allocation8 + $0x280] sm:$0xff] %v648_v27  ;;  %v650_v37 = vadd.f32 %v522_v28, %v138_v24  ;;  %v397_v41 = vld [vmem:[#allocation7 + $0x2a8] sm:$0xff]  ;;  %v142_v44 = vld [vmem:[#allocation2 + $0x2b0] sm:$0xff] }
  0x82   :  { %v524_v38 = vmul.f32 %v396_v36, %v268_v35  ;;  %v651_v42 = vadd.f32 %v523_v33, %v139_v29  ;;  %v525_v43 = vmul.f32 %v397_v41, %v269_v40  ;;  %v270_v45 = vld [vmem:[#allocation5 + $0x2b0] sm:$0xff]  ;;  %v143_v49 = vld [vmem:[#allocation2 + $0x2b8] sm:$0xff]  ;;  %v144_v54 = vld [vmem:[#allocation2 + $0x2c0] sm:$0xff] }
  0x83   :  { %777 = vst [vmem:[#allocation8 + $0x288] sm:$0xff] %v649_v32  ;;  %v398_v46 = vld [vmem:[#allocation7 + $0x2b0] sm:$0xff]  ;;  %778 = vst [vmem:[#allocation8 + $0x290] sm:$0xff] %v650_v37  ;;  %v271_v50 = vld [vmem:[#allocation5 + $0x2b8] sm:$0xff] }
  0x84   :  { %v652_v47 = vadd.f32 %v524_v38, %v140_v34  ;;  %v526_v48 = vmul.f32 %v398_v46, %v270_v45  ;;  %v399_v51 = vld [vmem:[#allocation7 + $0x2b8] sm:$0xff]  ;;  %779 = vst [vmem:[#allocation8 + $0x298] sm:$0xff] %v651_v42  ;;  %v653_v52 = vadd.f32 %v525_v43, %v141_v39  ;;  %v272_v55 = vld [vmem:[#allocation5 + $0x2c0] sm:$0xff]  ;;  %v145_v59 = vld [vmem:[#allocation2 + $0x2c8] sm:$0xff] }
  0x85   :  { %v527_v53 = vmul.f32 %v399_v51, %v271_v50  ;;  %v400_v56 = vld [vmem:[#allocation7 + $0x2c0] sm:$0xff]  ;;  %v273_v60 = vld [vmem:[#allocation5 + $0x2c8] sm:$0xff]  ;;  %v146_v0 = vld [vmem:[#allocation2 + $0x2d0] sm:$0xff] }
  0x86   :  { %780 = vst [vmem:[#allocation8 + $0x2a0] sm:$0xff] %v652_v47  ;;  %v654_v57 = vadd.f32 %v526_v48, %v142_v44  ;;  %v528_v58 = vmul.f32 %v400_v56, %v272_v55  ;;  %v401_v61 = vld [vmem:[#allocation7 + $0x2c8] sm:$0xff]  ;;  %781 = vst [vmem:[#allocation8 + $0x2a8] sm:$0xff] %v653_v52  ;;  %v274_v1 = vld [vmem:[#allocation5 + $0x2d0] sm:$0xff] }
  0x87   :  { %v655_v62 = vadd.f32 %v527_v53, %v143_v49  ;;  %v529_v63 = vmul.f32 %v401_v61, %v273_v60  ;;  %v402_v2 = vld [vmem:[#allocation7 + $0x2d0] sm:$0xff]  ;;  %v147_v5 = vld [vmem:[#allocation2 + $0x2d8] sm:$0xff]  ;;  %v148_v10 = vld [vmem:[#allocation2 + $0x2e0] sm:$0xff] }
  0x88   :  { %782 = vst [vmem:[#allocation8 + $0x2b0] sm:$0xff] %v654_v57  ;;  %v656_v3 = vadd.f32 %v528_v58, %v144_v54  ;;  %v530_v4 = vmul.f32 %v402_v2, %v274_v1  ;;  %v275_v6 = vld [vmem:[#allocation5 + $0x2d8] sm:$0xff]  ;;  %v276_v11 = vld [vmem:[#allocation5 + $0x2e0] sm:$0xff]  ;;  %v149_v15 = vld [vmem:[#allocation2 + $0x2e8] sm:$0xff] }
  0x89   :  { %v403_v7 = vld [vmem:[#allocation7 + $0x2d8] sm:$0xff]  ;;  %783 = vst [vmem:[#allocation8 + $0x2b8] sm:$0xff] %v655_v62  ;;  %v657_v8 = vadd.f32 %v529_v63, %v145_v59  ;;  %v404_v12 = vld [vmem:[#allocation7 + $0x2e0] sm:$0xff]  ;;  %v277_v16 = vld [vmem:[#allocation5 + $0x2e8] sm:$0xff] }
  0x8a   :  { %v531_v9 = vmul.f32 %v403_v7, %v275_v6  ;;  %784 = vst [vmem:[#allocation8 + $0x2c0] sm:$0xff] %v656_v3  ;;  %v658_v13 = vadd.f32 %v530_v4, %v146_v0  ;;  %v532_v14 = vmul.f32 %v404_v12, %v276_v11  ;;  %v405_v17 = vld [vmem:[#allocation7 + $0x2e8] sm:$0xff]  ;;  %v150_v20 = vld [vmem:[#allocation2 + $0x2f0] sm:$0xff]  ;;  %v151_v25 = vld [vmem:[#allocation2 + $0x2f8] sm:$0xff] }
  0x8b   :  { %785 = vst [vmem:[#allocation8 + $0x2c8] sm:$0xff] %v657_v8  ;;  %v533_v19 = vmul.f32 %v405_v17, %v277_v16  ;;  %v278_v21 = vld [vmem:[#allocation5 + $0x2f0] sm:$0xff]  ;;  %v279_v26 = vld [vmem:[#allocation5 + $0x2f8] sm:$0xff]  ;;  %v152_v30 = vld [vmem:[#allocation2 + $0x300] sm:$0xff] }
  0x8c   :  { %v659_v18 = vadd.f32 %v531_v9, %v147_v5  ;;  %v406_v22 = vld [vmem:[#allocation7 + $0x2f0] sm:$0xff]  ;;  %786 = vst [vmem:[#allocation8 + $0x2d0] sm:$0xff] %v658_v13  ;;  %v660_v23 = vadd.f32 %v532_v14, %v148_v10  ;;  %v407_v27 = vld [vmem:[#allocation7 + $0x2f8] sm:$0xff]  ;;  %v280_v31 = vld [vmem:[#allocation5 + $0x300] sm:$0xff] }
  0x8d   :  { %v534_v24 = vmul.f32 %v406_v22, %v278_v21  ;;  %v661_v28 = vadd.f32 %v533_v19, %v149_v15  ;;  %v535_v29 = vmul.f32 %v407_v27, %v279_v26  ;;  %v408_v32 = vld [vmem:[#allocation7 + $0x300] sm:$0xff]  ;;  %v153_v35 = vld [vmem:[#allocation2 + $0x308] sm:$0xff]  ;;  %v154_v40 = vld [vmem:[#allocation2 + $0x310] sm:$0xff] }
  0x8e   :  { %787 = vst [vmem:[#allocation8 + $0x2d8] sm:$0xff] %v659_v18  ;;  %788 = vst [vmem:[#allocation8 + $0x2e0] sm:$0xff] %v660_v23  ;;  %v536_v34 = vmul.f32 %v408_v32, %v280_v31  ;;  %v281_v36 = vld [vmem:[#allocation5 + $0x308] sm:$0xff]  ;;  %v282_v41 = vld [vmem:[#allocation5 + $0x310] sm:$0xff] }
  0x8f   :  { %v662_v33 = vadd.f32 %v534_v24, %v150_v20  ;;  %v409_v37 = vld [vmem:[#allocation7 + $0x308] sm:$0xff]  ;;  %789 = vst [vmem:[#allocation8 + $0x2e8] sm:$0xff] %v661_v28  ;;  %v663_v38 = vadd.f32 %v535_v29, %v151_v25  ;;  %v410_v42 = vld [vmem:[#allocation7 + $0x310] sm:$0xff]  ;;  %v155_v45 = vld [vmem:[#allocation2 + $0x318] sm:$0xff] }
  0x90   :  { %v537_v39 = vmul.f32 %v409_v37, %v281_v36  ;;  %v664_v43 = vadd.f32 %v536_v34, %v152_v30  ;;  %v538_v44 = vmul.f32 %v410_v42, %v282_v41  ;;  %v283_v46 = vld [vmem:[#allocation5 + $0x318] sm:$0xff]  ;;  %v156_v50 = vld [vmem:[#allocation2 + $0x320] sm:$0xff]  ;;  %v157_v55 = vld [vmem:[#allocation2 + $0x328] sm:$0xff] }
  0x91   :  { %790 = vst [vmem:[#allocation8 + $0x2f0] sm:$0xff] %v662_v33  ;;  %v411_v47 = vld [vmem:[#allocation7 + $0x318] sm:$0xff]  ;;  %791 = vst [vmem:[#allocation8 + $0x2f8] sm:$0xff] %v663_v38  ;;  %v284_v51 = vld [vmem:[#allocation5 + $0x320] sm:$0xff] }
  0x92   :  { %v665_v48 = vadd.f32 %v537_v39, %v153_v35  ;;  %v539_v49 = vmul.f32 %v411_v47, %v283_v46  ;;  %v412_v52 = vld [vmem:[#allocation7 + $0x320] sm:$0xff]  ;;  %792 = vst [vmem:[#allocation8 + $0x300] sm:$0xff] %v664_v43  ;;  %v666_v53 = vadd.f32 %v538_v44, %v154_v40  ;;  %v285_v56 = vld [vmem:[#allocation5 + $0x328] sm:$0xff]  ;;  %v158_v60 = vld [vmem:[#allocation2 + $0x330] sm:$0xff] }
  0x93   :  { %v540_v54 = vmul.f32 %v412_v52, %v284_v51  ;;  %v413_v57 = vld [vmem:[#allocation7 + $0x328] sm:$0xff]  ;;  %v286_v61 = vld [vmem:[#allocation5 + $0x330] sm:$0xff]  ;;  %v159_v1 = vld [vmem:[#allocation2 + $0x338] sm:$0xff] }
  0x94   :  { %793 = vst [vmem:[#allocation8 + $0x308] sm:$0xff] %v665_v48  ;;  %v667_v58 = vadd.f32 %v539_v49, %v155_v45  ;;  %v541_v59 = vmul.f32 %v413_v57, %v285_v56  ;;  %v414_v62 = vld [vmem:[#allocation7 + $0x330] sm:$0xff]  ;;  %794 = vst [vmem:[#allocation8 + $0x310] sm:$0xff] %v666_v53  ;;  %v287_v2 = vld [vmem:[#allocation5 + $0x338] sm:$0xff] }
  0x95   :  { %v668_v63 = vadd.f32 %v540_v54, %v156_v50  ;;  %v542_v0 = vmul.f32 %v414_v62, %v286_v61  ;;  %v415_v3 = vld [vmem:[#allocation7 + $0x338] sm:$0xff]  ;;  %v160_v6 = vld [vmem:[#allocation2 + $0x340] sm:$0xff]  ;;  %v161_v11 = vld [vmem:[#allocation2 + $0x348] sm:$0xff] }
  0x96   :  { %795 = vst [vmem:[#allocation8 + $0x318] sm:$0xff] %v667_v58  ;;  %v669_v4 = vadd.f32 %v541_v59, %v157_v55  ;;  %v543_v5 = vmul.f32 %v415_v3, %v287_v2  ;;  %v288_v7 = vld [vmem:[#allocation5 + $0x340] sm:$0xff]  ;;  %v289_v12 = vld [vmem:[#allocation5 + $0x348] sm:$0xff]  ;;  %v162_v16 = vld [vmem:[#allocation2 + $0x350] sm:$0xff] }
  0x97   :  { %v416_v8 = vld [vmem:[#allocation7 + $0x340] sm:$0xff]  ;;  %796 = vst [vmem:[#allocation8 + $0x320] sm:$0xff] %v668_v63  ;;  %v670_v9 = vadd.f32 %v542_v0, %v158_v60  ;;  %v417_v13 = vld [vmem:[#allocation7 + $0x348] sm:$0xff]  ;;  %v290_v17 = vld [vmem:[#allocation5 + $0x350] sm:$0xff] }
  0x98   :  { %v544_v10 = vmul.f32 %v416_v8, %v288_v7  ;;  %797 = vst [vmem:[#allocation8 + $0x328] sm:$0xff] %v669_v4  ;;  %v671_v14 = vadd.f32 %v543_v5, %v159_v1  ;;  %v545_v15 = vmul.f32 %v417_v13, %v289_v12  ;;  %v418_v18 = vld [vmem:[#allocation7 + $0x350] sm:$0xff]  ;;  %v163_v21 = vld [vmem:[#allocation2 + $0x358] sm:$0xff]  ;;  %v164_v26 = vld [vmem:[#allocation2 + $0x360] sm:$0xff] }
  0x99   :  { %798 = vst [vmem:[#allocation8 + $0x330] sm:$0xff] %v670_v9  ;;  %v546_v20 = vmul.f32 %v418_v18, %v290_v17  ;;  %v291_v22 = vld [vmem:[#allocation5 + $0x358] sm:$0xff]  ;;  %v292_v27 = vld [vmem:[#allocation5 + $0x360] sm:$0xff]  ;;  %v165_v31 = vld [vmem:[#allocation2 + $0x368] sm:$0xff] }
  0x9a   :  { %v672_v19 = vadd.f32 %v544_v10, %v160_v6  ;;  %v419_v23 = vld [vmem:[#allocation7 + $0x358] sm:$0xff]  ;;  %799 = vst [vmem:[#allocation8 + $0x338] sm:$0xff] %v671_v14  ;;  %v673_v24 = vadd.f32 %v545_v15, %v161_v11  ;;  %v420_v28 = vld [vmem:[#allocation7 + $0x360] sm:$0xff]  ;;  %v293_v32 = vld [vmem:[#allocation5 + $0x368] sm:$0xff] }
  0x9b   :  { %v547_v25 = vmul.f32 %v419_v23, %v291_v22  ;;  %v674_v29 = vadd.f32 %v546_v20, %v162_v16  ;;  %v548_v30 = vmul.f32 %v420_v28, %v292_v27  ;;  %v421_v33 = vld [vmem:[#allocation7 + $0x368] sm:$0xff]  ;;  %v166_v36 = vld [vmem:[#allocation2 + $0x370] sm:$0xff]  ;;  %v167_v41 = vld [vmem:[#allocation2 + $0x378] sm:$0xff] }
  0x9c   :  { %800 = vst [vmem:[#allocation8 + $0x340] sm:$0xff] %v672_v19  ;;  %801 = vst [vmem:[#allocation8 + $0x348] sm:$0xff] %v673_v24  ;;  %v549_v35 = vmul.f32 %v421_v33, %v293_v32  ;;  %v294_v37 = vld [vmem:[#allocation5 + $0x370] sm:$0xff]  ;;  %v295_v42 = vld [vmem:[#allocation5 + $0x378] sm:$0xff] }
  0x9d   :  { %v675_v34 = vadd.f32 %v547_v25, %v163_v21  ;;  %v422_v38 = vld [vmem:[#allocation7 + $0x370] sm:$0xff]  ;;  %802 = vst [vmem:[#allocation8 + $0x350] sm:$0xff] %v674_v29  ;;  %v676_v39 = vadd.f32 %v548_v30, %v164_v26  ;;  %v423_v43 = vld [vmem:[#allocation7 + $0x378] sm:$0xff]  ;;  %v168_v46 = vld [vmem:[#allocation2 + $0x380] sm:$0xff] }
  0x9e   :  { %v550_v40 = vmul.f32 %v422_v38, %v294_v37  ;;  %v677_v44 = vadd.f32 %v549_v35, %v165_v31  ;;  %v551_v45 = vmul.f32 %v423_v43, %v295_v42  ;;  %v296_v47 = vld [vmem:[#allocation5 + $0x380] sm:$0xff]  ;;  %v169_v51 = vld [vmem:[#allocation2 + $0x388] sm:$0xff]  ;;  %v170_v56 = vld [vmem:[#allocation2 + $0x390] sm:$0xff] }
  0x9f   :  { %803 = vst [vmem:[#allocation8 + $0x358] sm:$0xff] %v675_v34  ;;  %v424_v48 = vld [vmem:[#allocation7 + $0x380] sm:$0xff]  ;;  %804 = vst [vmem:[#allocation8 + $0x360] sm:$0xff] %v676_v39  ;;  %v297_v52 = vld [vmem:[#allocation5 + $0x388] sm:$0xff] }
  0xa0   :  { %v678_v49 = vadd.f32 %v550_v40, %v166_v36  ;;  %v552_v50 = vmul.f32 %v424_v48, %v296_v47  ;;  %v425_v53 = vld [vmem:[#allocation7 + $0x388] sm:$0xff]  ;;  %805 = vst [vmem:[#allocation8 + $0x368] sm:$0xff] %v677_v44  ;;  %v679_v54 = vadd.f32 %v551_v45, %v167_v41  ;;  %v298_v57 = vld [vmem:[#allocation5 + $0x390] sm:$0xff]  ;;  %v171_v61 = vld [vmem:[#allocation2 + $0x398] sm:$0xff] }
  0xa1   :  { %v553_v55 = vmul.f32 %v425_v53, %v297_v52  ;;  %v426_v58 = vld [vmem:[#allocation7 + $0x390] sm:$0xff]  ;;  %v299_v62 = vld [vmem:[#allocation5 + $0x398] sm:$0xff]  ;;  %v172_v2 = vld [vmem:[#allocation2 + $0x3a0] sm:$0xff] }
  0xa2   :  { %806 = vst [vmem:[#allocation8 + $0x370] sm:$0xff] %v678_v49  ;;  %v680_v59 = vadd.f32 %v552_v50, %v168_v46  ;;  %v554_v60 = vmul.f32 %v426_v58, %v298_v57  ;;  %v427_v63 = vld [vmem:[#allocation7 + $0x398] sm:$0xff]  ;;  %807 = vst [vmem:[#allocation8 + $0x378] sm:$0xff] %v679_v54  ;;  %v300_v3 = vld [vmem:[#allocation5 + $0x3a0] sm:$0xff] }
  0xa3   :  { %v681_v0 = vadd.f32 %v553_v55, %v169_v51  ;;  %v555_v1 = vmul.f32 %v427_v63, %v299_v62  ;;  %v428_v4 = vld [vmem:[#allocation7 + $0x3a0] sm:$0xff]  ;;  %v173_v7 = vld [vmem:[#allocation2 + $0x3a8] sm:$0xff]  ;;  %v174_v12 = vld [vmem:[#allocation2 + $0x3b0] sm:$0xff] }
  0xa4   :  { %808 = vst [vmem:[#allocation8 + $0x380] sm:$0xff] %v680_v59  ;;  %v682_v5 = vadd.f32 %v554_v60, %v170_v56  ;;  %v556_v6 = vmul.f32 %v428_v4, %v300_v3  ;;  %v301_v8 = vld [vmem:[#allocation5 + $0x3a8] sm:$0xff]  ;;  %v302_v13 = vld [vmem:[#allocation5 + $0x3b0] sm:$0xff]  ;;  %v175_v17 = vld [vmem:[#allocation2 + $0x3b8] sm:$0xff] }
  0xa5   :  { %v429_v9 = vld [vmem:[#allocation7 + $0x3a8] sm:$0xff]  ;;  %809 = vst [vmem:[#allocation8 + $0x388] sm:$0xff] %v681_v0  ;;  %v683_v10 = vadd.f32 %v555_v1, %v171_v61  ;;  %v430_v14 = vld [vmem:[#allocation7 + $0x3b0] sm:$0xff]  ;;  %v303_v18 = vld [vmem:[#allocation5 + $0x3b8] sm:$0xff] }
  0xa6   :  { %v557_v11 = vmul.f32 %v429_v9, %v301_v8  ;;  %810 = vst [vmem:[#allocation8 + $0x390] sm:$0xff] %v682_v5  ;;  %v684_v15 = vadd.f32 %v556_v6, %v172_v2  ;;  %v558_v16 = vmul.f32 %v430_v14, %v302_v13  ;;  %v431_v19 = vld [vmem:[#allocation7 + $0x3b8] sm:$0xff]  ;;  %v176_v22 = vld [vmem:[#allocation2 + $0x3c0] sm:$0xff]  ;;  %v177_v27 = vld [vmem:[#allocation2 + $0x3c8] sm:$0xff] }
  0xa7   :  { %811 = vst [vmem:[#allocation8 + $0x398] sm:$0xff] %v683_v10  ;;  %v559_v21 = vmul.f32 %v431_v19, %v303_v18  ;;  %v304_v23 = vld [vmem:[#allocation5 + $0x3c0] sm:$0xff]  ;;  %v305_v28 = vld [vmem:[#allocation5 + $0x3c8] sm:$0xff]  ;;  %v178_v32 = vld [vmem:[#allocation2 + $0x3d0] sm:$0xff] }
  0xa8   :  { %v685_v20 = vadd.f32 %v557_v11, %v173_v7  ;;  %v432_v24 = vld [vmem:[#allocation7 + $0x3c0] sm:$0xff]  ;;  %812 = vst [vmem:[#allocation8 + $0x3a0] sm:$0xff] %v684_v15  ;;  %v686_v25 = vadd.f32 %v558_v16, %v174_v12  ;;  %v433_v29 = vld [vmem:[#allocation7 + $0x3c8] sm:$0xff]  ;;  %v306_v33 = vld [vmem:[#allocation5 + $0x3d0] sm:$0xff] }
  0xa9   :  { %v560_v26 = vmul.f32 %v432_v24, %v304_v23  ;;  %v687_v30 = vadd.f32 %v559_v21, %v175_v17  ;;  %v561_v31 = vmul.f32 %v433_v29, %v305_v28  ;;  %v434_v34 = vld [vmem:[#allocation7 + $0x3d0] sm:$0xff]  ;;  %v179_v37 = vld [vmem:[#allocation2 + $0x3d8] sm:$0xff]  ;;  %v180_v42 = vld [vmem:[#allocation2 + $0x3e0] sm:$0xff] }
  0xaa   :  { %813 = vst [vmem:[#allocation8 + $0x3a8] sm:$0xff] %v685_v20  ;;  %814 = vst [vmem:[#allocation8 + $0x3b0] sm:$0xff] %v686_v25  ;;  %v562_v36 = vmul.f32 %v434_v34, %v306_v33  ;;  %v307_v38 = vld [vmem:[#allocation5 + $0x3d8] sm:$0xff]  ;;  %v308_v43 = vld [vmem:[#allocation5 + $0x3e0] sm:$0xff] }
  0xab   :  { %v688_v35 = vadd.f32 %v560_v26, %v176_v22  ;;  %v435_v39 = vld [vmem:[#allocation7 + $0x3d8] sm:$0xff]  ;;  %815 = vst [vmem:[#allocation8 + $0x3b8] sm:$0xff] %v687_v30  ;;  %v689_v40 = vadd.f32 %v561_v31, %v177_v27  ;;  %v436_v44 = vld [vmem:[#allocation7 + $0x3e0] sm:$0xff]  ;;  %v181_v47 = vld [vmem:[#allocation2 + $0x3e8] sm:$0xff] }
  0xac   :  { %v563_v41 = vmul.f32 %v435_v39, %v307_v38  ;;  %v690_v45 = vadd.f32 %v562_v36, %v178_v32  ;;  %v564_v46 = vmul.f32 %v436_v44, %v308_v43  ;;  %v309_v48 = vld [vmem:[#allocation5 + $0x3e8] sm:$0xff]  ;;  %v182_v52 = vld [vmem:[#allocation2 + $0x3f0] sm:$0xff]  ;;  %v183_v57 = vld [vmem:[#allocation2 + $0x3f8] sm:$0xff] }
  0xad   :  { %816 = vst [vmem:[#allocation8 + $0x3c0] sm:$0xff] %v688_v35  ;;  %v437_v49 = vld [vmem:[#allocation7 + $0x3e8] sm:$0xff]  ;;  %817 = vst [vmem:[#allocation8 + $0x3c8] sm:$0xff] %v689_v40  ;;  %v310_v53 = vld [vmem:[#allocation5 + $0x3f0] sm:$0xff] }
  0xae   :  { %v691_v50 = vadd.f32 %v563_v41, %v179_v37  ;;  %v565_v51 = vmul.f32 %v437_v49, %v309_v48  ;;  %v438_v54 = vld [vmem:[#allocation7 + $0x3f0] sm:$0xff]  ;;  %818 = vst [vmem:[#allocation8 + $0x3d0] sm:$0xff] %v690_v45  ;;  %v692_v55 = vadd.f32 %v564_v46, %v180_v42  ;;  %v311_v58 = vld [vmem:[#allocation5 + $0x3f8] sm:$0xff] }
  0xaf   :  { %v566_v56 = vmul.f32 %v438_v54, %v310_v53  ;;  %v439_v59 = vld [vmem:[#allocation7 + $0x3f8] sm:$0xff] }
  0xb0   :  { %819 = vst [vmem:[#allocation8 + $0x3d8] sm:$0xff] %v691_v50  ;;  %v693_v60 = vadd.f32 %v565_v51, %v181_v47  ;;  %v567_v61 = vmul.f32 %v439_v59, %v311_v58  ;;  %820 = vst [vmem:[#allocation8 + $0x3e0] sm:$0xff] %v692_v55 }
  0xb1   :  { %v694_v62 = vadd.f32 %v566_v56, %v182_v52 }
  0xb2   :  { %821 = vst [vmem:[#allocation8 + $0x3e8] sm:$0xff] %v693_v60  ;;  %v695_v63 = vadd.f32 %v567_v61, %v183_v57 }
  0xb3   :  { %822 = vst [vmem:[#allocation8 + $0x3f0] sm:$0xff] %v694_v62 }
  0xb4   :  { %823 = vst [vmem:[#allocation8 + $0x3f8] sm:$0xff] %v695_v63 }
  0xb5   :  { %919 = shalt.err (!%p916_p5)
}
  0xb6   :  { %835 = dma.vmem_to_hbm [thread:$0]  %s830_s2, 16384, %s987_s3, [#allocation4], %s936_s17, %s936_s17, %s937_s18  }
  0xb7   :  { %932 = dma.done.wait [#allocation4], 16384  }
  0xb8   :  { %933 = vsyncadd [#allocation4], 4294950912 }
  0xb9   :  { %839 = vsyncpa [#allocation3], 1 }
  0xba   :  { %840 = vsyncpa [#allocation6], 1 }
  0xbb   :  { %841 = vsyncpa [#allocation4], 1 }

</bundles_post_ra>
